<compile_context>
chip_gen: v5e
topology: v5e:2x2
jax: 0.10.0
libtpu: 0.0.40
codegen_flags: <defaults>
</compile_context>

<pallas_src>
import functools

import jax
import jax.numpy as jnp
from jax.experimental import pallas as pl
from jax.experimental.pallas import tpu as pltpu


_NEG_PAD = -1.0e30  # value for padded feature-logit columns: keeps pads out of max/sum-exp


# -------------------- hardware / tiling helpers --------------------

def _round_up(x, m):
    return (x + m - 1) // m * m


def _hw_config():
    """(max_rows per row tile, vmem_limit_bytes) per TPU generation."""
    kind = ""
    try:
        kind = jax.devices()[0].device_kind.lower()
    except Exception:  # pragma: no cover - defensive
        pass
    if "v5e" in kind or "v5 lite" in kind or "v5lite" in kind:
        # compute/DMA balance point ~240 rows; 128 MiB physical VMEM
        return 256, 96 * 1024 * 1024
    if "v6" in kind:
        # balance point ~680 rows vs the per-step weight stream; 128 MiB physical VMEM
        return 1024, 96 * 1024 * 1024
    if "v7" in kind:
        # 64 MiB physical VMEM per TensorCore -> leave headroom
        return 768, 48 * 1024 * 1024
    return 512, 48 * 1024 * 1024


def _seq_tiling(seq, max_rows):
    """Rows per tile along the sequence axis (a tile never spans a batch boundary)."""
    if seq <= max_rows:
        return seq
    # Prefer multiples of 16 (bf16 sublane packing), then 8; tile must divide seq.
    for align in (16, 8):
        divs = [d for d in range(align, max_rows + 1, align) if seq % d == 0]
        if divs:
            return max(divs)
    # No aligned divisor (e.g. prime seq): fall back to the whole sequence as one tile.
    return seq


def _vocab_tiling(vocab):
    """(lane-dense vocab tile tn, padded vocab vp); tn divides vp, tn % 128 == 0."""
    vp128 = _round_up(vocab, 128)
    if vp128 <= 2048:
        return vp128, vp128                       # single lane-dense vocab tile
    for tn in (1024, 512):
        if vocab % tn == 0:
            return tn, vocab
    return 1024, _round_up(vocab, 1024)           # <2% padding for GPT-sized vocabs


# -------------------- kernels --------------------

def _mixture_logits_kernel(w_ref, lm_ref, wdec_ref, feat_ref, out_ref):
    w = w_ref[0]                                               # clamped mixture weight (SMEM)
    logits = jnp.dot(lm_ref[...], wdec_ref[...],
                     preferred_element_type=jnp.float32)       # (ts, tn) bf16 x bf16 -> f32
    # feat_ref is (1, tn): free sublane broadcast (no expansion matmul).
    out_ref[...] = (logits * w + feat_ref[...] * (1.0 - w)).astype(out_ref.dtype)


def _mixture_nll_kernel(w_ref, lm_ref, wdec_ref, feat_ref, tgt_ref,
                        nll_ref, m_scr, l_scr, p_scr):
    v = pl.program_id(2)
    nv = pl.num_programs(2)
    tn = wdec_ref.shape[1]

    @pl.when(v == 0)
    def _():
        m_scr[...] = jnp.full(m_scr.shape, -jnp.inf, m_scr.dtype)
        l_scr[...] = jnp.zeros(l_scr.shape, l_scr.dtype)
        p_scr[...] = jnp.zeros(p_scr.shape, p_scr.dtype)

    w = w_ref[0]
    logits = jnp.dot(lm_ref[...], wdec_ref[...],
                     preferred_element_type=jnp.float32)       # (ts, tn)
    # Mixture; padded vocab columns end up ~ -1e30*(1-w) and vanish from max/sum-exp.
    logits = logits * w + feat_ref[...] * (1.0 - w)

    tgt = tgt_ref[...]                                         # (ts, 1) int32, 0 = ignore

    # Online logsumexp across vocab tiles.
    m_new = jnp.maximum(m_scr[...], jnp.max(logits, axis=-1, keepdims=True))
    alpha = jnp.exp(m_scr[...] - m_new)
    l_scr[...] = alpha * l_scr[...] + jnp.sum(jnp.exp(logits - m_new),
                                              axis=-1, keepdims=True)
    m_scr[...] = m_new

    # Target-logit pick: tile-local column iota vs (tgt - v*tn); exactly one tile matches.
    col = jax.lax.broadcasted_iota(jnp.int32, logits.shape, 1)
    p_scr[...] += jnp.sum(jnp.where(col == (tgt - v * tn), logits, 0.0),
                          axis=-1, keepdims=True)

    @pl.when(v == nv - 1)
    def _():
        lse = m_scr[...] + jnp.log(l_scr[...])
        nll_ref[...] = jnp.where(tgt != 0, lse - p_scr[...], 0.0)


# -------------------- wrappers --------------------

def _prep_inputs(lm_hidden, feature_hidden, w_decoder, w_feature, lm_weighting):
    B, S, H = lm_hidden.shape
    V = w_decoder.shape[1]
    tn, vp = _vocab_tiling(V)

    lm_bf16 = lm_hidden if lm_hidden.dtype == jnp.bfloat16 else lm_hidden.astype(jnp.bfloat16)

    # Pass a persistent bf16 decoder copy to make this a no-op (avoids an H*V HBM cast pass).
    w_dec = w_decoder if w_decoder.dtype == jnp.bfloat16 else w_decoder.astype(jnp.bfloat16)
    if w_dec.shape[1] != vp:
        w_dec = jnp.pad(w_dec, ((0, 0), (0, vp - w_dec.shape[1])))   # zero pad columns

    # Tiny (B,F)@(F,V) feature matmul hoisted out of the kernel (computed once per call).
    feat = jnp.dot(feature_hidden.astype(jnp.bfloat16), w_feature.astype(jnp.bfloat16),
                   preferred_element_type=jnp.float32)               # (B, V) f32
    if vp != V:
        # Pad columns get a huge negative mixed logit (decoder pad columns are zero), so the
        # loss kernel needs no explicit pad masking; the logits path slices them off.
        feat = jnp.pad(feat, ((0, 0), (0, vp - V)), constant_values=_NEG_PAD)
    feat = feat.reshape(B, 1, vp)

    w_mix = jnp.clip(lm_weighting.astype(jnp.float32).reshape(1), 0.001, 0.999)
    return lm_bf16, w_dec, feat, w_mix, (B, S, H, V, vp, tn)


def mixture_lm_logits(lm_hidden, feature_hidden, w_decoder, w_feature, lm_weighting):
    lm_bf16, w_dec, feat, w_mix, (B, S, H, V, vp, tn) = _prep_inputs(
        lm_hidden, feature_hidden, w_decoder, w_feature, lm_weighting)
    max_rows, vmem_limit = _hw_config()
    ts = _seq_tiling(S, max_rows)
    ns, nv = S // ts, vp // tn

    if B * S >= vp:
        # Activations are the larger operand: keep each row tile resident, stream weights.
        grid = (B, ns, nv)
        lm_map = lambda b, s, v: (b, s, 0)
        wd_map = lambda b, s, v: (0, v)
        ft_map = lambda b, s, v: (b, 0, v)
        out_map = lambda b, s, v: (b, s, v)
    else:
        # Weights are the larger operand: fetch each (H, tn) weight tile once, sweep rows.
        grid = (nv, B, ns)
        lm_map = lambda v, b, s: (b, s, 0)
        wd_map = lambda v, b, s: (0, v)
        ft_map = lambda v, b, s: (b, 0, v)
        out_map = lambda v, b, s: (b, s, v)

    grid_spec = pltpu.PrefetchScalarGridSpec(
        num_scalar_prefetch=0,
        grid=grid,
        in_specs=[
            pl.BlockSpec(memory_space=pltpu.MemorySpace.SMEM),              # mixture weight
            pl.BlockSpec((pl.Squeezed(), ts, H), lm_map),                   # lm hidden rows
            pl.BlockSpec((H, tn), wd_map),                                  # decoder weight cols
            pl.BlockSpec((pl.Squeezed(), 1, tn), ft_map),                   # feature logits row
        ],
        out_specs=pl.BlockSpec((pl.Squeezed(), ts, tn), out_map),
    )
    out = pl.pallas_call(
        _mixture_logits_kernel,
        # bf16 output: the inference path is HBM-write bound, halve the writeback.
        out_shape=jax.ShapeDtypeStruct((B, S, vp), jnp.bfloat16),
        grid_spec=grid_spec,
        compiler_params=pltpu.CompilerParams(
            dimension_semantics=("parallel", "parallel", "parallel"),
            vmem_limit_bytes=vmem_limit),
    )(w_mix, lm_bf16, w_dec, feat)
    if vp != V:
        out = out[:, :, :V]
    return out


def mixture_lm_loss(lm_hidden, feature_hidden, w_decoder, w_feature, lm_weighting, lm_labels):
    lm_bf16, w_dec, feat, w_mix, (B, S, H, V, vp, tn) = _prep_inputs(
        lm_hidden, feature_hidden, w_decoder, w_feature, lm_weighting)
    max_rows, vmem_limit = _hw_config()
    ts = _seq_tiling(S, max_rows)
    ns, nv = S // ts, vp // tn

    # Shifted targets: position (b, s) is scored against labels[b, s+1]; last -> 0 (ignored).
    tgt = jnp.concatenate([lm_labels[:, 1:], jnp.zeros((B, 1), lm_labels.dtype)], axis=1)
    tgt = tgt.astype(jnp.int32).reshape(B, S, 1)

    grid_spec = pltpu.PrefetchScalarGridSpec(
        num_scalar_prefetch=0,
        grid=(B, ns, nv),                          # vocab (online-LSE reduction) innermost
        in_specs=[
            pl.BlockSpec(memory_space=pltpu.MemorySpace.SMEM),              # mixture weight
            pl.BlockSpec((pl.Squeezed(), ts, H), lambda b, s, v: (b, s, 0)),
            pl.BlockSpec((H, tn), lambda b, s, v: (0, v)),
            pl.BlockSpec((pl.Squeezed(), 1, tn), lambda b, s, v: (b, 0, v)),
            pl.BlockSpec((pl.Squeezed(), ts, 1), lambda b, s, v: (b, s, 0)),
        ],
        out_specs=pl.BlockSpec((pl.Squeezed(), ts, 1), lambda b, s, v: (b, s, 0)),
        scratch_shapes=[pltpu.VMEM((ts, 1), jnp.float32)] * 3,
    )
    nll = pl.pallas_call(
        _mixture_nll_kernel,
        out_shape=jax.ShapeDtypeStruct((B, S, 1), jnp.float32),
        grid_spec=grid_spec,
        compiler_params=pltpu.CompilerParams(
            dimension_semantics=("parallel", "parallel", "arbitrary"),
            vmem_limit_bytes=vmem_limit),
    )(w_mix, lm_bf16, w_dec, feat, tgt)

    # Valid-token count computed from data already in HBM (no extra kernel output stream).
    count = jnp.sum(tgt != 0).astype(jnp.float32)
    # NOTE: like torch NLLLoss(ignore_index=0), if every target is ignored count==0 -> NaN.
    return jnp.sum(nll) / count


def mixture_lm_forward(lm_hidden, feature_hidden, w_decoder, w_feature, lm_weighting,
                       lm_labels=None):
    # TODO(synk): eval-only metrics / top-k accuracy tracking not implemented (stateful side effects).
    if lm_labels is not None:
        return mixture_lm_loss(lm_hidden, feature_hidden, w_decoder, w_feature,
                               lm_weighting, lm_labels)
    return mixture_lm_logits(lm_hidden, feature_hidden, w_decoder, w_feature, lm_weighting)


if __name__ == "__main__":
    key = jax.random.PRNGKey(0)
    B, S, H, F, V = 2, 8, 32, 16, 256
    k1, k2, k3, k4, k5 = jax.random.split(key, 5)

    lm_hidden = jax.random.normal(k1, (B, S, H), jnp.float32)
    feature_hidden = jax.random.normal(k2, (B, F), jnp.float32)
    # Parameters: decoder Linear(H->V, bias=False) stored transposed; feature decoder Linear(F->V).
    w_decoder = (0.02 * jax.random.normal(k3, (H, V))).astype(jnp.float32)
    w_feature = (0.02 * jax.random.normal(k4, (F, V))).astype(jnp.float32)
    lm_weighting = jnp.array([0.5], jnp.float32)
    lm_labels = jax.random.randint(k5, (B, S), 1, V).astype(jnp.int32)
    lm_labels = lm_labels.at[0, 3].set(0)            # exercise ignore_index=0

    # Persistent bf16 decoder copy (avoids a per-call f32->bf16 HBM pass inside the wrapper).
    w_decoder_bf16 = w_decoder.astype(jnp.bfloat16)

    # Reference with the same bf16-input / f32-accumulate arithmetic.
    w = jnp.clip(lm_weighting, 0.001, 0.999)[0]
    ref_lm = jnp.dot(lm_hidden.reshape(-1, H).astype(jnp.bfloat16),
                     w_decoder.astype(jnp.bfloat16),
                     preferred_element_type=jnp.float32).reshape(B, S, V)
    ref_feat = jnp.dot(feature_hidden.astype(jnp.bfloat16), w_feature.astype(jnp.bfloat16),
                       preferred_element_type=jnp.float32)
    ref_logits = ref_lm * w + ref_feat[:, None, :] * (1.0 - w)

    # --- logits (inference) path (bf16 output) ---
    logits = mixture_lm_forward(lm_hidden, feature_hidden, w_decoder_bf16, w_feature,
                                lm_weighting)
    jax.block_until_ready(logits)
    assert logits.shape == (B, S, V)
    assert jnp.allclose(logits.astype(jnp.float32), ref_logits, rtol=2e-2, atol=5e-3)

    # --- fused loss (training) path ---
    loss = mixture_lm_forward(lm_hidden, feature_hidden, w_decoder_bf16, w_feature,
                              lm_weighting, lm_labels=lm_labels)
    jax.block_until_ready(loss)
    lg = ref_logits[:, :-1, :].reshape(-1, V)
    lb = lm_labels[:, 1:].reshape(-1)
    logsm = jax.nn.log_softmax(lg, axis=-1)
    mask = lb != 0
    picked = jnp.take_along_axis(logsm, lb[:, None], axis=1)[:, 0]
    ref_loss = -jnp.sum(jnp.where(mask, picked, 0.0)) / jnp.sum(mask)
    assert jnp.allclose(loss, ref_loss, rtol=2e-3, atol=2e-3)

    # --- padded-vocab path (V not a multiple of 128) ---
    Vodd = 200
    w_dec_odd = w_decoder[:, :Vodd]
    w_feat_odd = w_feature[:, :Vodd]
    labels_odd = jnp.clip(lm_labels, 0, Vodd - 1)

    logits_odd = mixture_lm_forward(lm_hidden, feature_hidden, w_dec_odd, w_feat_odd,
                                    lm_weighting)
    jax.block_until_ready(logits_odd)
    assert logits_odd.shape == (B, S, Vodd)
    assert jnp.allclose(logits_odd.astype(jnp.float32), ref_logits[:, :, :Vodd],
                        rtol=2e-2, atol=5e-3)

    loss_odd = mixture_lm_forward(lm_hidden, feature_hidden, w_dec_odd, w_feat_odd,
                                  lm_weighting, lm_labels=labels_odd)
    jax.block_until_ready(loss_odd)
    lg_o = ref_logits[:, :-1, :Vodd].reshape(-1, Vodd)
    lb_o = labels_odd[:, 1:].reshape(-1)
    logsm_o = jax.nn.log_softmax(lg_o, axis=-1)
    mask_o = lb_o != 0
    picked_o = jnp.take_along_axis(logsm_o, lb_o[:, None], axis=1)[:, 0]
    ref_loss_o = -jnp.sum(jnp.where(mask_o, picked_o, 0.0)) / jnp.sum(mask_o)
    assert jnp.allclose(loss_odd, ref_loss_o, rtol=2e-3, atol=2e-3)

    print("KERNEL_OK")
</pallas_src>

<mosaic_0001>
module attributes {stable_mosaic.version = 11 : i64} {
  func.func @_mixture_logits_kernel(%arg0: i32, %arg1: i32, %arg2: i32, %arg3: memref<1xf32, #tpu.memory_space<smem>>, %arg4: memref<1x8x32xbf16, #tpu.memory_space<vmem>>, %arg5: memref<32x256xbf16, #tpu.memory_space<vmem>>, %arg6: memref<1x1x256xf32, #tpu.memory_space<vmem>>, %arg7: memref<1x8x256xbf16, #tpu.memory_space<vmem>>) attributes {dimension_semantics = [#tpu.dimension_semantics<parallel>, #tpu.dimension_semantics<parallel>, #tpu.dimension_semantics<parallel>], iteration_bounds = array<i64: 1, 2, 1>, scalar_prefetch = 0 : i64, scratch_operands = 0 : i64, tpu.core_type = #tpu.core_type<tc>, window_params = [{transform_indices = @transform_0, window_bounds = array<i64: 1>}, {transform_indices = @transform_1, window_bounds = array<i64: 1, 8, 32>}, {transform_indices = @transform_2, window_bounds = array<i64: 32, 256>}, {transform_indices = @transform_3, window_bounds = array<i64: 1, 1, 256>}, {transform_indices = @transform_4, window_bounds = array<i64: 1, 8, 256>}]} {
    %c0 = arith.constant 0 : index
    %0 = memref.load %arg3[%c0] : memref<1xf32, #tpu.memory_space<smem>>
    %c0_0 = arith.constant 0 : index
    %c0_1 = arith.constant 0 : index
    %c0_2 = arith.constant 0 : index
    %1 = vector.load %arg4[%c0_0, %c0_1, %c0_2] : memref<1x8x32xbf16, #tpu.memory_space<vmem>>, vector<1x8x32xbf16>
    %2 = vector.shape_cast %1 : vector<1x8x32xbf16> to vector<8x32xbf16>
    %c0_3 = arith.constant 0 : index
    %c0_4 = arith.constant 0 : index
    %3 = vector.load %arg5[%c0_3, %c0_4] : memref<32x256xbf16, #tpu.memory_space<vmem>>, vector<32x256xbf16>
    %cst = arith.constant dense<0.000000e+00> : vector<8x256xf32>
    %4 = tpu.matmul %2, %3, %cst {dimension_numbers = #tpu.dot_dimension_numbers<[1], [0], [0], [1], [0, 0, 1, 1], [], []>} : vector<8x32xbf16>, vector<32x256xbf16>, vector<8x256xf32> -> vector<8x256xf32>
    %5 = vector.broadcast %0 : f32 to vector<8x256xf32>
    %6 = arith.mulf %4, %5 : vector<8x256xf32>
    %c0_5 = arith.constant 0 : index
    %c0_6 = arith.constant 0 : index
    %c0_7 = arith.constant 0 : index
    %7 = vector.load %arg6[%c0_5, %c0_6, %c0_7] : memref<1x1x256xf32, #tpu.memory_space<vmem>>, vector<1x1x256xf32>
    %8 = vector.shape_cast %7 : vector<1x1x256xf32> to vector<1x256xf32>
    %cst_8 = arith.constant 1.000000e+00 : f32
    %9 = arith.subf %cst_8, %0 : f32
    %10 = vector.broadcast %9 : f32 to vector<1x256xf32>
    %11 = arith.mulf %8, %10 : vector<1x256xf32>
    %12 = vector.broadcast %11 : vector<1x256xf32> to vector<8x256xf32>
    %13 = arith.addf %6, %12 : vector<8x256xf32>
    %14 = arith.truncf %13 : vector<8x256xf32> to vector<8x256xbf16>
    %c0_9 = arith.constant 0 : index
    %c0_10 = arith.constant 0 : index
    %c0_11 = arith.constant 0 : index
    %15 = vector.load %arg7[%c0_9, %c0_10, %c0_11] : memref<1x8x256xbf16, #tpu.memory_space<vmem>>, vector<1x8x256xbf16>
    %16 = vector.shape_cast %15 : vector<1x8x256xbf16> to vector<8x256xbf16>
    %17 = vector.shape_cast %14 : vector<8x256xbf16> to vector<1x8x256xbf16>
    tpu.vector_store %arg7[%c0_9, %c0_10, %c0_11], %17 {strides = array<i32>} : memref<1x8x256xbf16, #tpu.memory_space<vmem>>, vector<1x8x256xbf16>,
    return
  }
  func.func @transform_0(%arg0: i32, %arg1: i32, %arg2: i32) -> i32 {
    %c0_i32 = arith.constant 0 : i32
    %c0_i32_0 = arith.constant 0 : i32
    return %c0_i32 : i32
  }
  func.func @transform_1(%arg0: i32, %arg1: i32, %arg2: i32) -> (i32, i32, i32) {
    %c0_i32 = arith.constant 0 : i32
    %c0_i32_0 = arith.constant 0 : i32
    return %arg1, %arg2, %c0_i32 : i32, i32, i32
  }
  func.func @transform_2(%arg0: i32, %arg1: i32, %arg2: i32) -> (i32, i32) {
    %c0_i32 = arith.constant 0 : i32
    %c0_i32_0 = arith.constant 0 : i32
    return %c0_i32, %arg0 : i32, i32
  }
  func.func @transform_3(%arg0: i32, %arg1: i32, %arg2: i32) -> (i32, i32, i32) {
    %c0_i32 = arith.constant 0 : i32
    %c0_i32_0 = arith.constant 0 : i32
    return %arg1, %c0_i32, %arg0 : i32, i32, i32
  }
  func.func @transform_4(%arg0: i32, %arg1: i32, %arg2: i32) -> (i32, i32, i32) {
    %c0_i32 = arith.constant 0 : i32
    return %arg1, %arg2, %arg0 : i32, i32, i32
  }
}

</mosaic_0001>

<bundles_post_ra>
// kernel: tpu_custom_call.1
= control target key start
LH: loop header
LB: loop body
LE: loop exit
PB: predicated region body
PF: predicated region fallthrough
CT: control target
= control target key end

     0   :  { %s1028_s0 = inlined_call_operand.<no memory space> [shape: f32[1], index: 0, kind: input, shape index: {}]   ;;  %s1029_s1 = inlined_call_operand.hbm [shape: bf16[2,8,32], index: 1, kind: input, shape index: {}]   ;;  %s1030_s2 = inlined_call_operand.hbm [shape: bf16[32,256], index: 2, kind: input, shape index: {}]   ;;  %s1031_s3 = inlined_call_operand.hbm [shape: f32[2,1,256], index: 3, kind: input, shape index: {}]   ;;  %s1032_s4 = inlined_call_operand.hbm [shape: bf16[2,8,256], index: 4, kind: output, shape index: {}]  }
   0x1   :  { %1033 = sst [smem:[#allocation14_spill]] %s1029_s1 }
   0x2   :  { %1034 = sst [smem:[#allocation15_spill]] %s1030_s2 }
   0x3   :  { %9 = sst [smem:[#allocation2]] %s1028_s0 }
   0x4   :  { %10 = vsyncpa [#allocation4], 0 }
   0x5   :  { %12 = vsyncpa [#allocation4 + $0x1], 0 }
   0x6   :  { %13 = vsyncpa [#allocation7], 0 }
   0x7   :  { %14 = vsyncpa [#allocation5], 0 }
   0x8   :  { %16 = vsyncpa [#allocation5 + $0x1], 0  ;;  %s860_s17 = smov 0   ;;  %s862_s18 = smov 0  }
   0x9   :  { %s864_s19 = smov 0   ;;  %s866_s20 = smov 0  }
   0xa   :  { %s868_s21 = smov 0   ;;  %s870_s22 = smov 0  }
   0xb LB: > { %s891_s0 = sadd.s32 4294967295, %s827_s22   ;;  %s526_s23 = sadd.s32 4294967294, %s827_s22   ;;  %s827_s22 = sphi %s870_s22, %s22_s22   ;;  %s823_s21 = sphi %s868_s21, %s1047_s21   ;;  %s819_s20 = sphi %s866_s20, %s1046_s20   ;;  %s815_s19 = sphi %s864_s19, %s1045_s19   ;;  %s811_s18 = sphi %s862_s18, %s1044_s18   ;;  %s807_s17 = sphi %s860_s17, %s1043_s17  }
   0xc   : > { %s37_s24 = sadd.s32 1, %s823_s21  ;;  %s71_s25 = sadd.s32 1, %s815_s19 }
   0xd   : > { %p39_p0 = scmp.ge.s32.totalorder %s37_s24, 2  ;;  %p78_p1 = scmp.ne.s32.totalorder %s815_s19, %s811_s18 }
   0xe   : > { %p79_p2 = scmp.eq.s32.totalorder %s827_s22, 0  ;;  %p84_p3 = scmp.ne.s32.totalorder %s811_s18, %s807_s17 }
   0xf   : > { %s1049_s24 = smov (%p39_p0, %s37_s24), 0  ;;  %p166_p5 = scmp.eq.s32.totalorder %s891_s0, 1 }
  0x10   : > { %p903_p4 = por %p79_p2, %p78_p1  ;;  %s66_s27 = ssub.s32 %s823_s21, %s1049_s24 }
  0x11   : > { %p172_p6 = scmp.eq.s32.totalorder %s526_s23, 1  ;;  %p69_p7 = scmp.eq.s32.totalorder %s66_s27, 0 }
  0x12   : > { %p910_p8 = por %p166_p5, %p78_p1  ;;  %p529_p10 = scmp.ge.s32.totalorder %s827_s22, 2 }
  0x13   : > { %p917_p9 = por %p172_p6, %p84_p3  ;;  %p593_p11 = scmp.lt.s32.totalorder %s827_s22, 2 }
  0x14   : > { %s922_s30 = scalar_select %p69_p7, %s815_s19, %s71_s25  }
  0x15   : > { %s212_s5 = sand.u32 1, %s827_s22   ;;  %s214_s6 = sand.u32 1, %s815_s19  }
  0x16   : > { %s530_s7 = sshll.u32 %s214_s6, 2  ;;  %s531_s8 = sshll.u32 %s823_s21, 2 }
  0x17   : > { %s1038_s1 = sld [smem:[#allocation14_spill]]  ;;  %s216_s12 = scalar_lea.vmem [#allocation3], %s530_s7 }
  0x18   : > { %s225_s13 = sshll.u32 %s216_s12, 4  ;;  %p934_p12 = pnand %p593_p11, %p903_p4  ;;  %s226_s13 = int_to_ptr.vmem [resolvable:$true] %s225_s13 }
  0x19   : > { %s532_s16 = sshll.u32 %s214_s6, 1  ;;  %s213_s23 = scalar_lea.sflag [#allocation4], %s212_s5 }
  0x1a   : > { %p85_p13 = scmp.eq.s32.totalorder %s891_s0, 0  ;;  %p527_p0 = scmp.ge.s32.totalorder %s827_s22, 1 }
  0x1b   : > { %p179_p1 = scmp.lt.s32.totalorder %s827_s22, 3  ;;  %s1040_s2 = sld [smem:[#allocation15_spill]] }
  0x1c   : > { %p951_p2 = por %p85_p13, %p84_p3  ;;  %s829_s5 = smov [#allocation6]  }
  0x1d   : > { %s221_s11 = scalar_lea.hbm %s1038_s1, %s531_s8  ;;  %p955_p4 = pnand %p527_p0, %p179_p1 }
  0x1e   : > { %s223_s14 = sshll.u32 %s221_s11, 4  ;;  %s198_s6 = sshll.u32 %s829_s5, 4  ;;  %s224_s14 = int_to_ptr.hbm [resolvable:$true] %s223_s14  ;;  %s199_s6 = int_to_ptr.vmem [resolvable:$true] %s198_s6 }
  0x1f   : > { %584 = dma.hbm_to_vmem [thread:$0]  (!%p934_p12), %s224_s14, 64, %s226_s13, %s213_s23  }
  0x20   : > { %p577_p5 = pneg %p955_p4  ;;  %s533_s9 = sshll.u32 %s823_s21, 1 }
  0x21   : > { %s196_s7 = sshll.u32 %s1040_s2, 4  ;;  %s242_s12 = scalar_lea.hbm %s1031_s3, %s533_s9  ;;  %s197_s7 = int_to_ptr.hbm [resolvable:$true] %s196_s7 }
  0x22   : > { %p578_p6 = pnand %p577_p5, %p85_p13  ;;  %s236_s13 = scalar_lea.vmem [#allocation8], %s532_s16 }
  0x23   : > { %s246_s14 = sshll.u32 %s236_s13, 4  ;;  %s244_s25 = sshll.u32 %s242_s12, 4  ;;  %s245_s25 = int_to_ptr.hbm [resolvable:$true] %s244_s25  ;;  %s247_s14 = int_to_ptr.vmem [resolvable:$true] %s246_s14 }
  0x24   : > { %s830_s27 = smov 128   ;;  %s831_s1 = smov 8  }
  0x25   : > { %580 = dma.hbm_to_vmem [thread:$0]  (!%p578_p6), %s197_s7, 512, %s199_s6, [#allocation7], %s830_s27, %s830_s27, %s831_s1  }
  0x26   : > { %587 = dma.hbm_to_vmem [thread:$0]  (!%p934_p12), %s245_s25, 32, %s247_s14, %s213_s23  }
  0x27   : > { %255 = sbr.rel (%p955_p4) target bundleno = 197 (0xc5), region = 36  ;;  %s257_s5 = sand.u32 (!%p955_p4), 1, %s891_s0  }
  0x28   : > { %s973_s2 = sand.u32 (!%p955_p4), 1, %s811_s18   ;;  %s258_s9 = scalar_lea.sflag (!%p955_p4), [#allocation4], %s257_s5 }
  0x29   : > { %s535_s16 = sshll.u32 (!%p955_p4), %s973_s2, 2 }
  0x2a   : > { %s261_s10 = scalar_lea.vmem (!%p955_p4), [#allocation3], %s535_s16 }
  0x2c   : > { %790 = dma.done.wait (%p951_p2), %s258_s9, 64  }
  0x2d   : > { %792 = vsyncadd (%p951_p2), %s258_s9, 4294967232 }
  0x2e   : > { %794 = dma.done.wait (%p85_p13), [#allocation7], 512  }
  0x2f   : > { %796 = vsyncadd (%p85_p13), [#allocation7], 4294966784  ;;  %s537_s1 = sshll.u32 %s973_s2, 1 }
  0x30   : > { %s276_s15 = scalar_lea.vmem [#allocation8], %s537_s1 }
  0x31   : > { %798 = dma.done.wait (%p951_p2), %s258_s9, 32  }
  0x32   : > { %800 = vsyncadd (%p951_p2), %s258_s9, 4294967264  ;;  %v549_v0 = vld [vmem:[#allocation6 + $0x10] sm:$0xf]  ;;  %v565_v1 = vld [vmem:[#allocation6 + $0x14] sm:$0xf0]  ;;  %vm337_vm0 = vcmask 261120  }
  0x33   : > { %v564_v2 = vld [vmem:[#allocation6 + $0x14] sm:$0xf]  ;;  %v550_v3 = vor.u32 %v565_v1, %v549_v0  ;;  %v551_v4 = vld [vmem:[#allocation6 + $0x18] sm:$0xf0]  ;;  %v541_v5 = vld [vmem:[#allocation6] sm:$0xf] }
  0x34   : > { %v563_v6 = vld [vmem:[#allocation6 + $0x4] sm:$0xf0]  ;;  %v554_v7 = vor.u32 %v564_v2, %v551_v4  ;;  %v562_v8 = vld [vmem:[#allocation6 + $0x4] sm:$0xf]  ;;  %v543_v9 = vld [vmem:[#allocation6 + $0x8] sm:$0xf0] }
  0x35   : > { %347 = vmatpush.bf16.msra.mxu0 %v550_v3  ;;  %v542_v10 = vor.u32 %v563_v6, %v541_v5  ;;  %v546_v11 = vor.u32 %v562_v8, %v543_v9  ;;  %v312_v12 = vld [vmem:[%s261_s10] sm:$0xf]  ;;  %s311_s0 = sld [smem:[#allocation2]]  ;;  %v370_v13 = vld [vmem:[%s276_s15] sm:$0x3]  ;;  %s538_s7 = sshll.u32 %s973_s2, 3 }
  0x36   : > { %360 = vmatpush.bf16.msra.mxu1 %v554_v7  ;;  %s566_s26 = sshll.u32 %s819_s20, 3  ;;  %s306_s12 = scalar_lea.vmem [#allocation9], %s538_s7 }
  0x37   : > { %s399_s11 = scalar_lea.hbm %s1032_s4, %s566_s26  ;;  %s401_s13 = sshll.u32 %s306_s12, 4  ;;  %s402_s13 = int_to_ptr.vmem [resolvable:$true] %s401_s13 }
  0x38   : > { %s403_s14 = sshll.u32 %s399_s11, 4  ;;  %s384_s20 = scalar_lea.sflag [#allocation5], %s973_s2  ;;  %s404_s14 = int_to_ptr.hbm [resolvable:$true] %s403_s14 }
  0x39   : > { %348 = vmatpush.bf16.msra.mxu0 %v542_v10  ;;  %s751_s25 = sshra.s32 %s404_s14, 4  ;;  %s757_s9 = scalar_lea.hbm %s1032_s4, 16  ;;  %s752_s25 = int_to_ptr.hbm [resolvable:$true] %s751_s25 }
  0x3a   : > { %361 = vmatpush.bf16.msra.mxu1 %v546_v11  ;;  %s753_s27 = scalar_lea.hbm %s752_s25, 8  ;;  %p758_p12 = scmp.lt.s32.totalorder %s752_s25, %s1032_s4 }
  0x3b   : > { %s371_s23 = ssub.f32 1.0, %s311_s0  ;;  %v367_v16 = vstv %s311_s0  ;;  %p754_p3 = scmp.ne.s32.totalorder %s752_s25, %s753_s27 }
  0x3c   : > { %555 = vmatmul.msk.bf16.vlgmr.msra.gmra.mxu0 %vm337_vm0, %v312_v12  ;;  %p759_p13 = scmp.lt.s32.totalorder %s757_s9, %s753_s27 }
  0x3d   : > { %556 = vmatmul.msk.bf16.vlgmr.msra.gmra.mxu1 %vm337_vm0, %v312_v12  ;;  %v372_v14 = vstv %s371_s23  ;;  %p755_p7 = pnand %p754_p3, %p910_p8 }
  0x3e   : > { %v373_v15 = vmul.f32 %v372_v14, %v370_v13  ;;  %p760_p0 = por %p759_p13, %p758_p12 }
  0x3f   : > { %p756_p11 = pneg %p755_p7 }
  0x40   : > { %v375_v17 = vperm.slane %v373_v15, 0  ;;  %v376_v19 = vperm.slane %v373_v15, 1 }
  0x41   : > { %p761_p1 = pnand %p760_p0, %p756_p11 }
  0xb9   : > { %v350_v18 = vpop.f32.mrf.mxu0 }
  0xba   : > { %v368_v20 = vmul.f32 %v367_v16, %v350_v18  ;;  %v363_v21 = vpop.f32.mrf.mxu1 }
  0xbb   : > { %v369_v22 = vmul.f32 %v367_v16, %v363_v21 }
  0xbc   : > { %v379_v23 = vadd.f32 %v375_v17, %v368_v20 }
  0xbd   : > { %v380_v24 = vadd.f32 %v376_v19, %v369_v22 }
  0xbf   : > { %v381_v25 = vpack.c.bf16 %v380_v24, %v379_v23 }
  0xc1   : > { %v352_v26 = vpop.f32.mrf.mxu0  ;;  %382 = vst [vmem:[%s306_s12] sm:$0xff] %v381_v25 }
  0xc2   : > { %v365_v27 = vpop.f32.mrf.mxu1 }
  0xc3   : > { %764 = shalt.err (!%p761_p1)
}
  0xc4   : > { %575 = dma.vmem_to_hbm [thread:$0]  (%p910_p8), %s402_s13, 128, %s404_s14, %s384_s20  }
  0xc5 PF: > { %s415_s2 = sand.u32 1, %s807_s17   ;;  %p589_p2 = pnand %p529_p10, %p917_p9 }
  0xc6   : > { %s416_s15 = scalar_lea.sflag [#allocation5], %s415_s2 }
  0xc7   : > { %p590_p4 = pneg %p589_p2 }
  0xc9   : > { %802 = dma.done.wait (%p590_p4), %s416_s15, 128  }
  0xca   : > { %804 = vsyncadd (%p590_p4), %s416_s15, 4294967168  ;;  %s22_s22 = sadd.s32 1, %s827_s22   ;;  %s1043_s17 = smov %s811_s18 }
  0xcb   : > { %p19_p5 = scmp.ge.s32.totalorder %s22_s22, 4   ;;  %s1044_s18 = smov %s815_s19 }
  0xcc   : > { %s1045_s19 = smov %s922_s30  ;;  %s1046_s20 = smov %s823_s21 }
  0xcd   : > { %s1047_s21 = smov %s1049_s24  ;;  %21 = sbr.rel (!%p19_p5) target bundleno = 11 (0xb), region = 97 }
  0xd2   :  { %422 = vsyncpa [#allocation4], 1 }
  0xd3   :  { %424 = vsyncpa [#allocation4 + $0x1], 1 }
  0xd4   :  { %425 = vsyncpa [#allocation7], 1 }
  0xd5   :  { %426 = vsyncpa [#allocation5], 1 }
  0xd6   :  { %428 = vsyncpa [#allocation5 + $0x1], 1 }

</bundles_post_ra>
